<compile_context>
chip_gen: v5e
topology: v5e:2x2
jax: 0.10.0
libtpu: 0.0.40
codegen_flags: <defaults>
</compile_context>

<pallas_src>
import functools

import jax
import jax.numpy as jnp
from jax.experimental import pallas as pl
from jax.experimental.pallas import tpu as pltpu


def _dam_channel_kernel(x_ref, o_ref, *, compute_dtype, approx_recip):
    # x_ref block: (B_tile, C, HW) in the input dtype; o_ref: same shape, out dtype.
    x = x_ref[...].astype(compute_dtype)  # in-kernel cast (bf16 on the fast path)

    # energy[b, i, j] = sum_hw x[b, i, hw] * x[b, j, hw]   (== bmm(Q, K^T)).
    # Contracting the last (lane) dim of BOTH operands lowers to the MXU's
    # transposed-RHS path -- no XLU transpose of the (C, HW) tile.
    energy = jnp.einsum("bqd,bkd->bqk", x, x, preferred_element_type=jnp.float32)

    # Reference: softmax(rowmax(E) - E).  rowmax(E) - E followed by the softmax's
    # own max-shift collapses to exp(rowmin(E) - E): a single row reduction and
    # no (C, C) 'energy_new' temporary.  Exponents are <= 0 -> numerically stable.
    row_min = jnp.min(energy, axis=-1, keepdims=True)           # (B, C, 1)
    e = jnp.exp(row_min - energy)                               # (B, C, C), f32
    denom = jnp.sum(e, axis=-1, keepdims=True)                  # (B, C, 1)
    attn = e * pl.reciprocal(denom, approx=approx_recip)        # (B, C, C), f32

    # out = attention @ value : (B, C, C) @ (B, C, HW) -> (B, C, HW)
    attn = attn.astype(compute_dtype)                           # bf16 MXU inputs
    out = jnp.einsum("bqk,bkd->bqd", attn, x, preferred_element_type=jnp.float32)
    o_ref[...] = out.astype(o_ref.dtype)


def _block_vmem_bytes(bt, c, hw, in_elt, out_elt, cmp_elt):
    """Rough VMEM footprint of one grid step (double-buffered I/O + temporaries)."""
    in_blk = bt * c * hw * in_elt
    out_blk = bt * c * hw * out_elt
    tmp = (bt * c * hw * cmp_elt            # in-kernel cast of x
           + 3 * bt * c * c * 4             # energy, exp, attn (f32)
           + bt * c * c * cmp_elt           # attn cast for the MXU
           + bt * c * hw * 4)               # f32 matmul result
    return 2 * (in_blk + out_blk) + tmp


def _pick_batch_tile(n, c, hw, in_elt, out_elt, cmp_elt,
                     target_in_bytes=4 << 20, vmem_budget=40 << 20):
    """Largest divisor of n whose input slab is ~4 MiB and whose step fits VMEM."""
    best = 1
    for d in range(1, n + 1):
        if n % d:
            continue
        if _block_vmem_bytes(d, c, hw, in_elt, out_elt, cmp_elt) > vmem_budget:
            continue
        if d * c * hw * in_elt <= target_in_bytes or d == 1:
            best = d
    return best


def dam_channel(x, gamma, *, compute_dtype=jnp.bfloat16, batch_tile=None):
    """Forward pass of DAMChannel.

    Args:
      x: (N, C, H, W) array (NCHW, same as the PyTorch module).
      gamma: (1,) parameter. The reference forward() never uses gamma (declared
             in __init__ only), so it is kept purely for parameter-shape parity.
      compute_dtype: dtype fed to the MXU (bf16 default; accumulation is f32,
             softmax math is f32).  Use jnp.float32 for exact-reference parity.
      batch_tile: batch elements per grid step; auto-picked if None.
    Returns:
      (N, C, H, W) array, same dtype as x.
    """
    del gamma  # unused in the reference forward pass
    N, C, H, W = x.shape
    HW = H * W
    in_dtype = x.dtype
    out_dtype = x.dtype

    x_flat = x.reshape(N, C, HW)  # free view change; no pad / no wrapper cast

    in_elt = jnp.dtype(in_dtype).itemsize
    out_elt = jnp.dtype(out_dtype).itemsize
    cmp_elt = jnp.dtype(compute_dtype).itemsize
    if batch_tile is None:
        batch_tile = _pick_batch_tile(N, C, HW, in_elt, out_elt, cmp_elt)

    # Explicit VMEM budget for the chosen tile, with headroom; capped at 64 MiB
    # so the request is valid on v7x (64 MiB physical) as well as v5e/v6e.
    vmem_limit = int(min(
        _block_vmem_bytes(batch_tile, C, HW, in_elt, out_elt, cmp_elt) + (4 << 20),
        64 << 20))
    # TODO(synk): for very large C*HW (single block would blow the VMEM budget
    # even at batch_tile=1), stream HW chunks with a two-pass emit_pipeline
    # (accumulate energy, softmax once, then stream attn@x) instead of holding
    # the full (C, HW) slab resident.

    kernel = functools.partial(
        _dam_channel_kernel,
        compute_dtype=compute_dtype,
        approx_recip=(compute_dtype != jnp.float32),  # EUP vrcp on the fast path
    )

    # Scheduler hint: two bmm's (2*C*C*HW MACs each) + C*C exps per batch element.
    cost = pl.CostEstimate(
        flops=4 * N * C * C * HW,
        transcendentals=N * C * C,
        bytes_accessed=N * C * HW * (in_elt + out_elt),
    )

    out_flat = pl.pallas_call(
        kernel,
        out_shape=jax.ShapeDtypeStruct((N, C, HW), out_dtype),
        grid_spec=pltpu.PrefetchScalarGridSpec(
            num_scalar_prefetch=0,
            grid=(N // batch_tile,),
            # Last two block dims equal the full array dims -> no (8,128) padding
            # copies needed, Mosaic handles the internal layout.
            in_specs=[pl.BlockSpec((batch_tile, C, HW), lambda b: (b, 0, 0))],
            out_specs=pl.BlockSpec((batch_tile, C, HW), lambda b: (b, 0, 0)),
        ),
        compiler_params=pltpu.CompilerParams(
            dimension_semantics=("parallel",),  # batch axis shards across TCs (v7x)
            vmem_limit_bytes=vmem_limit,
        ),
        cost_estimate=cost,
    )(x_flat)

    return out_flat.reshape(N, C, H, W)


def reference_dam_channel(x):
    """Pure-JAX reference mirroring the PyTorch forward for verification."""
    N, C, H, W = x.shape
    q = x.reshape(N, C, H * W)
    energy = jnp.einsum("nch,ndh->ncd", q, q)
    energy_new = jnp.max(energy, axis=-1, keepdims=True) - energy
    attn = jax.nn.softmax(energy_new, axis=-1)
    out = jnp.einsum("ncd,ndh->nch", attn, q)
    return out.reshape(N, C, H, W)


if __name__ == "__main__":
    key = jax.random.PRNGKey(0)
    N, C, H, W = 2, 4, 16, 16
    x = jax.random.normal(key, (N, C, H, W), dtype=jnp.float32)

    # Parameter init per nn.Module.__init__: gamma = zeros(1) (unused in forward).
    gamma = jnp.zeros((1,), dtype=jnp.float32)

    ref = reference_dam_channel(x)

    # Exact-precision path: f32 MXU inputs + exact reciprocal -> tight match.
    out_f32 = jax.block_until_ready(dam_channel(x, gamma, compute_dtype=jnp.float32))
    assert out_f32.shape == (N, C, H, W)
    assert jnp.allclose(out_f32, ref, atol=1e-4, rtol=1e-4), "f32 path mismatch"

    # Fast (default) path: bf16 MXU inputs, f32 accumulation, approx reciprocal.
    # Compare against the reference evaluated on the bf16-quantized input so the
    # residual delta is only the bf16 attn cast + approx reciprocal (~1e-3 rel).
    out_fast = jax.block_until_ready(dam_channel(x, gamma))
    x_q = x.astype(jnp.bfloat16).astype(jnp.float32)
    ref_q = reference_dam_channel(x_q)
    assert out_fast.shape == (N, C, H, W)
    assert jnp.allclose(out_fast, ref_q, atol=2e-2, rtol=2e-2), "bf16 path mismatch"

    print("KERNEL_OK")
</pallas_src>

<mosaic_0001>
module attributes {stable_mosaic.version = 11 : i64} {
  func.func @_dam_channel_kernel(%arg0: i32, %arg1: memref<2x4x256xf32, #tpu.memory_space<vmem>>, %arg2: memref<2x4x256xf32, #tpu.memory_space<vmem>>) attributes {dimension_semantics = [#tpu.dimension_semantics<parallel>], iteration_bounds = array<i64: 1>, scalar_prefetch = 0 : i64, scratch_operands = 0 : i64, tpu.core_type = #tpu.core_type<tc>, window_params = [{transform_indices = @transform_0, window_bounds = array<i64: 2, 4, 256>}, {transform_indices = @transform_1, window_bounds = array<i64: 2, 4, 256>}]} {
    %c0 = arith.constant 0 : index
    %c0_0 = arith.constant 0 : index
    %c0_1 = arith.constant 0 : index
    %0 = vector.load %arg1[%c0, %c0_0, %c0_1] : memref<2x4x256xf32, #tpu.memory_space<vmem>>, vector<2x4x256xf32>
    "tpu.trace_start"() <{level = 10 : i32, message = "bqd,bkd->bqk"}> : () -> ()
    %cst = arith.constant dense<0.000000e+00> : vector<2x4x4xf32>
    %1 = tpu.matmul %0, %0, %cst {dimension_numbers = #tpu.dot_dimension_numbers<[2], [2], [1], [1], [0, 0, 0, 1, 1, 1], [0], [0]>} : vector<2x4x256xf32>, vector<2x4x256xf32>, vector<2x4x4xf32> -> vector<2x4x4xf32>
    "tpu.trace_stop"() : () -> ()
    %cst_2 = arith.constant dense<0x7F800000> : vector<2x4xf32>
    %2 = vector.multi_reduction <minimumf>, %1, %cst_2 [2] : vector<2x4x4xf32> to vector<2x4xf32>
    %3 = vector.shape_cast %2 : vector<2x4xf32> to vector<2x4x1xf32>
    %4 = vector.broadcast %3 : vector<2x4x1xf32> to vector<2x4x4xf32>
    %5 = arith.subf %4, %1 : vector<2x4x4xf32>
    %6 = math.exp %5 : vector<2x4x4xf32>
    %cst_3 = arith.constant dense<0.000000e+00> : vector<2x4xf32>
    %7 = vector.multi_reduction <add>, %6, %cst_3 [2] : vector<2x4x4xf32> to vector<2x4xf32>
    %8 = vector.shape_cast %7 : vector<2x4xf32> to vector<2x4x1xf32>
    %9 = tpu.reciprocal %8 : vector<2x4x1xf32> -> vector<2x4x1xf32>
    %10 = vector.broadcast %9 : vector<2x4x1xf32> to vector<2x4x4xf32>
    %11 = arith.mulf %6, %10 : vector<2x4x4xf32>
    "tpu.trace_start"() <{level = 10 : i32, message = "bqk,bkd->bqd"}> : () -> ()
    %cst_4 = arith.constant dense<0.000000e+00> : vector<2x4x256xf32>
    %12 = tpu.matmul %11, %0, %cst_4 {dimension_numbers = #tpu.dot_dimension_numbers<[2], [1], [1], [2], [0, 0, 0, 1, 1, 2], [0], [0]>} : vector<2x4x4xf32>, vector<2x4x256xf32>, vector<2x4x256xf32> -> vector<2x4x256xf32>
    "tpu.trace_stop"() : () -> ()
    %c0_5 = arith.constant 0 : index
    %c0_6 = arith.constant 0 : index
    %c0_7 = arith.constant 0 : index
    %13 = vector.load %arg2[%c0_5, %c0_6, %c0_7] : memref<2x4x256xf32, #tpu.memory_space<vmem>>, vector<2x4x256xf32>
    tpu.vector_store %arg2[%c0_5, %c0_6, %c0_7], %12 {strides = array<i32>} : memref<2x4x256xf32, #tpu.memory_space<vmem>>, vector<2x4x256xf32>,
    return
  }
  func.func @transform_0(%arg0: i32) -> (i32, i32, i32) {
    %c0_i32 = arith.constant 0 : i32
    %c0_i32_0 = arith.constant 0 : i32
    %c0_i32_1 = arith.constant 0 : i32
    return %arg0, %c0_i32, %c0_i32_0 : i32, i32, i32
  }
  func.func @transform_1(%arg0: i32) -> (i32, i32, i32) {
    %c0_i32 = arith.constant 0 : i32
    %c0_i32_0 = arith.constant 0 : i32
    %c0_i32_1 = arith.constant 0 : i32
    return %arg0, %c0_i32, %c0_i32_0 : i32, i32, i32
  }
}

</mosaic_0001>

<bundles_post_ra>
// kernel: tpu_custom_call.1
= control target key start
LH: loop header
LB: loop body
LE: loop exit
PB: predicated region body
PF: predicated region fallthrough
CT: control target
= control target key end

     0   :  { %6 = vsyncpa [#allocation3], 0  ;;  %s423_s0 = inlined_call_operand.hbm [shape: f32[2,4,256], index: 0, kind: input, shape index: {}]   ;;  %s424_s1 = inlined_call_operand.hbm [shape: f32[2,4,256], index: 1, kind: output, shape index: {}]  }
   0x1   :  { %7 = vsyncpa [#allocation4], 0  ;;  %s12_s8 = sshll.u32 %s423_s0, 4  ;;  %s383_s9 = smov [#allocation2]   ;;  %s13_s8 = int_to_ptr.hbm [resolvable:$true] %s12_s8 }
   0x2   :  { %s14_s10 = sshll.u32 %s383_s9, 4  ;;  %s384_s11 = smov 128   ;;  %s15_s10 = int_to_ptr.vmem [resolvable:$true] %s14_s10 }
   0x3   :  { %s385_s12 = smov 8  }
   0x4   :  { %20 = dma.hbm_to_vmem [thread:$0]  %s13_s8, 256, %s15_s10, [#allocation3], %s384_s11, %s384_s11, %s385_s12  }
   0x5   :  { %379 = dma.done.wait [#allocation3], 256  }
   0x6   :  { %380 = vsyncadd [#allocation3], 4294967040  ;;  %v25_v0 = vld [vmem:[#allocation2] sm:$0xff]  ;;  %v26_v3 = vld [vmem:[#allocation2 + $0x8] sm:$0xff]  ;;  %vm129_vm0 = vcmask 27648   ;;  %vm185_vm1 = vcmask 1043456  }
   0x7   :  { %28 = vst [vmem:[#allocation1] ss:$2 sm:$0xff] %v25_v0  ;;  %vm181_vm6 = vcmask 31744   ;;  %s386_s0 = smov [#allocation5]   ;;  %s298_s16 = sshll.u32 %s424_s1, 4  ;;  %s299_s16 = int_to_ptr.hbm [resolvable:$true] %s298_s16 }
   0x8   :  { %s296_s13 = sshll.u32 %s386_s0, 4  ;;  %s297_s13 = int_to_ptr.vmem [resolvable:$true] %s296_s13 }
   0xe   :  { %v29_v1 = vld.sshfl [vmem:[#allocation1] sm:$0xff pattern:$0x75316420]  ;;  %v30_v2 = vld.sshfl [vmem:[#allocation1 + $0x8] sm:$0xff pattern:$0x75316420] }
   0xf   :  { %33 = vst [vmem:[#allocation1] ss:$2 sm:$0xff] %v25_v0 }
  0x16   :  { %v34_v4 = vld.sshfl [vmem:[#allocation1] sm:$0xff pattern:$0x75316420]  ;;  %v35_v5 = vld.sshfl [vmem:[#allocation1 + $0x8] sm:$0xff pattern:$0x75316420] }
  0x17   :  { %79 = vst [vmem:[#allocation1] ss:$2 sm:$0xff] %v26_v3  ;;  %53 = vmatpush.xpose.msra.mxu0 %v34_v4  ;;  %73 = vmatpush.xpose.msra.mxu1 %v35_v5 }
  0x1a   :  { %54 = vmatmul.f32.vlgmr.msra.gmra.mxu0 %v29_v1  ;;  %74 = vmatmul.f32.vlgmr.msra.gmra.mxu1 %v30_v2 }
  0x1e   :  { %v80_v6 = vld.sshfl [vmem:[#allocation1] sm:$0xff pattern:$0x75316420]  ;;  %v81_v7 = vld.sshfl [vmem:[#allocation1 + $0x8] sm:$0xff pattern:$0x75316420] }
  0x1f   :  { %84 = vst [vmem:[#allocation1] ss:$2 sm:$0xff] %v26_v3 }
  0x26   :  { %v85_v8 = vld.sshfl [vmem:[#allocation1] sm:$0xff pattern:$0x75316420]  ;;  %v86_v9 = vld.sshfl [vmem:[#allocation1 + $0x8] sm:$0xff pattern:$0x75316420] }
  0x27   :  { %104 = vmatpush.xpose.msra.mxu2 %v85_v8  ;;  %124 = vmatpush.xpose.msra.mxu3 %v86_v9  ;;  %178 = vst [vmem:[#allocation1] ss:$2 sm:$0xff] %v25_v0 }
  0x2a   :  { %105 = vmatmul.f32.vlgmr.msra.gmra.mxu2 %v80_v6  ;;  %125 = vmatmul.f32.vlgmr.msra.gmra.mxu3 %v81_v7 }
  0x2e   :  { %v179_v10 = vld.sshfl [vmem:[#allocation1] sm:$0xff pattern:$0x75316420]  ;;  %v180_v11 = vld.sshfl [vmem:[#allocation1 + $0x8] sm:$0xff pattern:$0x75316420] }
  0x2f   :  { %230 = vst [vmem:[#allocation1] ss:$2 sm:$0xff] %v26_v3  ;;  %313 = vmatpush.msk.msrb.mxu1 %vm185_vm1, %v180_v11  ;;  %311 = vmatpush.msk.msrb.mxu0 %vm185_vm1, %v179_v10 }
  0x36   :  { %v232_v30 = vld.sshfl [vmem:[#allocation1 + $0x8] sm:$0xff pattern:$0x75316420]  ;;  %v231_v31 = vld.sshfl [vmem:[#allocation1] sm:$0xff pattern:$0x75316420] }
  0x37   :  { %317 = vmatpush.msk.msrb.mxu3 %vm185_vm1, %v232_v30  ;;  %315 = vmatpush.msk.msrb.mxu2 %vm185_vm1, %v231_v31 }
  0x97   :  { %v55_v15 = vpop.f32.mrf.mxu0  ;;  %v75_v16 = vpop.f32.mrf.mxu1 }
  0x98   :  { %v76_v18 = vadd.f32 %v75_v16, %v55_v15 }
  0x9a   :  { %v130_v19 = vsel %vm129_vm0, %v76_v18, inf }
  0xad   :  { %v106_v12 = vpop.f32.mrf.mxu2  ;;  %v126_v13 = vpop.f32.mrf.mxu3 }
  0xae   :  { %v127_v14 = vadd.f32 %v126_v13, %v106_v12 }
  0xb0   :  { %v133_v17 = vsel %vm129_vm0, %v127_v14, inf }
  0xb1   :  { %134 = vmin.xlane.f32.xlu0 %v133_v17 }
  0xb9   :  { %131 = vmin.xlane.f32.xlu0 %v130_v19 }
 0x124   :  { %v135_v20 = vpop.xlane.xlu0 %134 }
 0x125   :  { %v137_v21 = vsub.f32 %v135_v20, %v127_v14 }
 0x127   :  { %v140_v22 = vmul.f32 1.442695, %v137_v21 }
 0x129   :  { %323 = vpow2.f32 %v140_v22 }
 0x12c   :  { %v132_v23 = vpop.xlane.xlu0 %131 }
 0x12d   :  { %v136_v24 = vsub.f32 %v132_v23, %v76_v18 }
 0x12f   :  { %v324_v25 = vpop.eup %323  ;;  %v138_v26 = vmul.f32 1.442695, %v136_v24 }
 0x130   :  { %v145_v27 = vsel %vm129_vm0, %v324_v25, 0.0 }
 0x131   :  { %325 = vpow2.f32 %v138_v26  ;;  %146 = vadd.xlane.f32.xlu1 %v145_v27 }
 0x137   :  { %v326_v28 = vpop.eup %325 }
 0x138   :  { %v142_v29 = vsel %vm129_vm0, %v326_v28, 0.0 }
 0x139   :  { %143 = vadd.xlane.f32.xlu1 %v142_v29 }
 0x1a4   :  { %v147_v32 = vpop.xlane.xlu1 %146 }
 0x1a5   :  { %327 = vrcp.f32 %v147_v32  ;;  %v173_v37 = vand.u32 2147483648, %v147_v32  ;;  %v171_v39 = vand.u32 2147483647, %v147_v32  ;;  %vm167_vm3 = vweird.f32 %v147_v32 }
 0x1a7   :  { %v174_v42 = vor.u32 1.1754944e-38, %v173_v37  ;;  %vm172_vm5 = vcmp.eq.f32.partialorder %v171_v39, 8.507059e+37 }
 0x1ab   :  { %v328_v33 = vpop.eup %327 }
 0x1ac   :  { %v163_v34 = vmul.f32 %v328_v33, %v147_v32  ;;  %v144_v35 = vpop.xlane.xlu1 %143  ;;  %vm168_vm2 = vweird.f32 %v328_v33 }
 0x1ad   :  { %329 = vrcp.f32 %v144_v35  ;;  %vm169_vm4 = vmor %vm167_vm3, %vm168_vm2  ;;  %v159_v48 = vand.u32 2147483648, %v144_v35  ;;  %v157_v50 = vand.u32 2147483647, %v144_v35  ;;  %vm153_vm8 = vweird.f32 %v144_v35 }
 0x1ae   :  { %v164_v36 = vsub.f32 1.0, %v163_v34 }
 0x1af   :  { %v160_v52 = vor.u32 1.1754944e-38, %v159_v48  ;;  %vm158_vm10 = vcmp.eq.f32.partialorder %v157_v50, 8.507059e+37 }
 0x1b0   :  { %v165_v38 = vmul.f32 %v328_v33, %v164_v36 }
 0x1b2   :  { %v166_v40 = vadd.f32 %v328_v33, %v165_v38 }
 0x1b3   :  { %v330_v41 = vpop.eup %329 }
 0x1b4   :  { %v149_v43 = vmul.f32 %v330_v41, %v144_v35  ;;  %v170_v44 = vsel %vm169_vm4, %v328_v33, %v166_v40  ;;  %vm154_vm7 = vweird.f32 %v330_v41 }
 0x1b5   :  { %v175_v45 = vsel %vm172_vm5, %v174_v42, %v170_v44  ;;  %vm155_vm9 = vmor %vm153_vm8, %vm154_vm7 }
 0x1b6   :  { %v150_v46 = vsub.f32 1.0, %v149_v43  ;;  %v177_v47 = vmul.f32 %v324_v25, %v175_v45 }
 0x1b8   :  { %v151_v49 = vmul.f32 %v330_v41, %v150_v46  ;;  %316 = vmatmul.msk.f32.vlgmr.msrb.gmra.mxu2 %vm181_vm6, %v177_v47  ;;  %318 = vmatmul.msk.f32.vlgmr.msrb.gmra.mxu3 %vm181_vm6, %v177_v47 }
 0x1ba   :  { %v152_v51 = vadd.f32 %v330_v41, %v151_v49 }
 0x1bc   :  { %v156_v53 = vsel %vm155_vm9, %v330_v41, %v152_v51 }
 0x1bd   :  { %v161_v54 = vsel %vm158_vm10, %v160_v52, %v156_v53 }
 0x1be   :  { %v176_v55 = vmul.f32 %v326_v28, %v161_v54 }
 0x1c0   :  { %312 = vmatmul.msk.f32.vlgmr.msrb.gmra.mxu0 %vm181_vm6, %v176_v55  ;;  %314 = vmatmul.msk.f32.vlgmr.msrb.gmra.mxu1 %vm181_vm6, %v176_v55 }
 0x23b   :  { %v277_v56 = vpop.f32.mrf.mxu3  ;;  %v257_v58 = vpop.f32.mrf.mxu2 }
 0x23c   :  { %v285_v57 = vrot.slane %v277_v56, 4 }
 0x23d   :  { %v227_v59 = vpop.f32.mrf.mxu1  ;;  %v207_v62 = vpop.f32.mrf.mxu0 }
 0x23e   :  { %v287_v60 = vsel %vm185_vm1, %v257_v58, %v285_v57  ;;  %v284_v61 = vrot.slane %v227_v59, 4 }
 0x23f   :  { %291 = vst [vmem:[#allocation5 + $0x8] sm:$0xff] %v287_v60 }
 0x240   :  { %v286_v63 = vsel %vm185_vm1, %v207_v62, %v284_v61 }
 0x241   :  { %290 = vst [vmem:[#allocation5] sm:$0xff] %v286_v63 }
 0x242   :  { %304 = dma.vmem_to_hbm [thread:$0]  %s297_s13, 256, %s299_s16, [#allocation4], %s384_s11, %s384_s11, %s385_s12  }
 0x243   :  { %381 = dma.done.wait [#allocation4], 256  }
 0x244   :  { %382 = vsyncadd [#allocation4], 4294967040 }
 0x245   :  { %309 = vsyncpa [#allocation3], 1 }
 0x246   :  { %310 = vsyncpa [#allocation4], 1 }

</bundles_post_ra>
